<compile_context>
chip_gen: v5e
topology: v5e:2x2
jax: 0.10.0
libtpu: 0.0.40
codegen_flags: <defaults>
</compile_context>

<pallas_src>
import math

import jax
import jax.numpy as jnp
from jax.experimental import pallas as pl
from jax.experimental.pallas import tpu as pltpu


def _round_up(x, m):
    return ((x + m - 1) // m) * m


def build_spiking_mlp_call(T, Bp, TB, K, Hp, Cp, tau, delta_t, vth):
    """Fused streaming kernel: grid = (batch tiles, timesteps)."""
    decay = math.exp(-delta_t / tau)       # LIF membrane decay AND rate-weight base
    wsum = sum(math.exp(-(T - 1 - t) * delta_t / tau) for t in range(T))
    out_scale = vth / wsum                 # spike amplitude folded into final scale
    nB = Bp // TB
    f32 = jnp.float32
    bf16 = jnp.bfloat16

    def kernel(x_ref, w1_ref, w2_ref, wc_ref,       # inputs
               feat_ref, out_ref,                   # outputs
               v1_ref, v2_ref, acc_ref):            # persistent VMEM carries
        t = pl.program_id(1)

        # ---- reset carried state at the first timestep of each batch tile ----
        @pl.when(t == 0)
        def _():
            v1_ref[...] = jnp.zeros_like(v1_ref)
            v2_ref[...] = jnp.zeros_like(v2_ref)
            acc_ref[...] = jnp.zeros_like(acc_ref)

        # ---- fc1: [TB, 784](bf16) @ [784, Hp](bf16) -> f32 -------------------
        i1 = jnp.dot(x_ref[...], w1_ref[...], preferred_element_type=f32)

        # ---- LIF 1 (f32): v <- decay*v + I ; spike {0,1} at v>=Vth; soft reset
        v1 = decay * v1_ref[...] + i1
        s1 = (v1 >= vth).astype(f32)
        v1_ref[...] = v1 - vth * s1

        # ---- fc2: {0,1} spikes in bf16, Vth applied after the dot ------------
        i2 = vth * jnp.dot(s1.astype(bf16), w2_ref[...], preferred_element_type=f32)

        # ---- LIF 2 ------------------------------------------------------------
        v2 = decay * v2_ref[...] + i2
        s2 = (v2 >= vth).astype(f32)
        v2_ref[...] = v2 - vth * s2

        # sn2 output (out_before_clf): spike train with amplitude Vth, lane-dense
        feat_ref[...] = vth * s2

        # ---- weight_rate_spikes folded before the classifier ------------------
        # acc_{T-1} = sum_t decay^(T-1-t) * s2_t
        acc_ref[...] = decay * acc_ref[...] + s2

        # ---- shared classifier, once per batch tile (T x fewer FLOPs) ---------
        @pl.when(t == T - 1)
        def _():
            out_ref[...] = out_scale * jnp.dot(acc_ref[...], wc_ref[...],
                                               preferred_element_type=f32)

    return pl.pallas_call(
        kernel,
        grid=(nB, T),
        out_shape=(jax.ShapeDtypeStruct((T * Bp, Hp), jnp.float32),   # sn2 spikes
                   jax.ShapeDtypeStruct((Bp, Cp), jnp.float32)),      # rate output
        in_specs=[
            pl.BlockSpec((TB, K), lambda bi, ti: (ti * nB + bi, 0)),  # x (time-major)
            pl.BlockSpec((K, Hp), lambda bi, ti: (0, 0)),             # w1 (resident)
            pl.BlockSpec((Hp, Hp), lambda bi, ti: (0, 0)),            # w2 (resident)
            pl.BlockSpec((Hp, Cp), lambda bi, ti: (0, 0)),            # wc (resident)
        ],
        out_specs=(
            pl.BlockSpec((TB, Hp), lambda bi, ti: (ti * nB + bi, 0)),
            pl.BlockSpec((TB, Cp), lambda bi, ti: (bi, 0)),           # resident over t
        ),
        scratch_shapes=[pltpu.VMEM((TB, Hp), jnp.float32),   # v1 (sn1 membrane)
                        pltpu.VMEM((TB, Hp), jnp.float32),   # v2 (sn2 membrane)
                        pltpu.VMEM((TB, Hp), jnp.float32)],  # weighted-rate acc
        compiler_params=pltpu.CompilerParams(
            dimension_semantics=("parallel", "arbitrary"),
            vmem_limit_bytes=32 * 1024 * 1024),
    )


def spiking_mlp_forward(x, w1, w2, wc, snn_setting, *, batch_tile=256):
    """x: [B, T, C, H, W] with C*H*W == 784; w1:[H,784], w2:[H,H], wc:[C,H]."""
    B, T = x.shape[0], x.shape[1]
    K = 784
    H = w1.shape[0]
    C = wc.shape[0]

    Hp = _round_up(H, 128)                     # lane-dense hidden width
    Cp = _round_up(C, 128)                     # lane-dense class width
    TB = min(batch_tile, _round_up(B, 16))     # bf16 sublane tile = 16 rows
    Bp = _round_up(B, TB)

    # time-major [T, Bp, 784] -> [T*Bp, 784] in bf16 (matches torch.cat over time)
    x_tm = jnp.transpose(x.reshape(B, T, K).astype(jnp.bfloat16), (1, 0, 2))
    x_tm = jnp.pad(x_tm, ((0, 0), (0, Bp - B), (0, 0))).reshape(T * Bp, K)

    # weights pre-transposed to [in, out], zero-padded to lane-dense widths
    w1p = jnp.pad(w1.T.astype(jnp.bfloat16), ((0, 0), (0, Hp - H)))
    w2p = jnp.pad(w2.T.astype(jnp.bfloat16), ((0, Hp - H), (0, Hp - H)))
    wcp = jnp.pad(wc.T.astype(jnp.float32), ((0, Hp - H), (0, Cp - C)))

    call = build_spiking_mlp_call(T, Bp, TB, K, Hp, Cp,
                                  snn_setting['tau'],
                                  snn_setting['delta_t'],
                                  snn_setting['Vth'])
    feat_p, out_p = call(x_tm, w1p, w2p, wcp)

    out_before_clf = feat_p.reshape(T, Bp, Hp)[:, :B, :H].reshape(T * B, H)
    out = out_p[:B, :C]
    return out_before_clf, out


if __name__ == "__main__":
    # Small, deterministic example (module hard-codes 784 = 1*28*28 inputs).
    B, T = 2, 8
    n_hidden, num_classes = 32, 10
    snn_setting = dict(timesteps=T, tau=1.0, delta_t=0.05, Vth=0.3, train_Vth=True)

    key = jax.random.PRNGKey(0)
    kx, k1, k2, kc = jax.random.split(key, 4)
    x = jax.random.uniform(kx, (B, T, 1, 28, 28), dtype=jnp.float32)
    # deterministic parameter init (bias=False everywhere in the module)
    w1 = jax.random.normal(k1, (n_hidden, 784), jnp.float32) / math.sqrt(784.0)
    w2 = jax.random.normal(k2, (n_hidden, n_hidden), jnp.float32) / math.sqrt(float(n_hidden))
    wc = jax.random.normal(kc, (num_classes, n_hidden), jnp.float32) / math.sqrt(float(n_hidden))

    out_before_clf, out = spiking_mlp_forward(x, w1, w2, wc, snn_setting)
    jax.block_until_ready((out_before_clf, out))

    assert out_before_clf.shape == (T * B, n_hidden)
    assert out.shape == (B, num_classes)
    assert bool(jnp.all(jnp.isfinite(out_before_clf)))
    assert bool(jnp.all(jnp.isfinite(out)))
    print("KERNEL_OK")
</pallas_src>

<mosaic_0001>
module attributes {stable_mosaic.version = 11 : i64} {
  func.func @kernel(%arg0: i32, %arg1: i32, %arg2: memref<16x784xbf16, #tpu.memory_space<vmem>>, %arg3: memref<784x128xbf16, #tpu.memory_space<vmem>>, %arg4: memref<128x128xbf16, #tpu.memory_space<vmem>>, %arg5: memref<128x128xf32, #tpu.memory_space<vmem>>, %arg6: memref<16x128xf32, #tpu.memory_space<vmem>>, %arg7: memref<16x128xf32, #tpu.memory_space<vmem>>, %arg8: memref<16x128xf32, #tpu.memory_space<vmem>>, %arg9: memref<16x128xf32, #tpu.memory_space<vmem>>, %arg10: memref<16x128xf32, #tpu.memory_space<vmem>>) attributes {dimension_semantics = [#tpu.dimension_semantics<parallel>, #tpu.dimension_semantics<arbitrary>], iteration_bounds = array<i64: 1, 8>, scalar_prefetch = 0 : i64, scratch_operands = 3 : i64, tpu.core_type = #tpu.core_type<tc>, window_params = [{transform_indices = @transform_0, window_bounds = array<i64: 16, 784>}, {pipeline_mode = #tpu.pipeline_mode<synchronous>, transform_indices = @transform_1, window_bounds = array<i64: 784, 128>}, {pipeline_mode = #tpu.pipeline_mode<synchronous>, transform_indices = @transform_2, window_bounds = array<i64: 128, 128>}, {pipeline_mode = #tpu.pipeline_mode<synchronous>, transform_indices = @transform_3, window_bounds = array<i64: 128, 128>}, {transform_indices = @transform_4, window_bounds = array<i64: 16, 128>}, {transform_indices = @transform_5, window_bounds = array<i64: 16, 128>}]} {
    %c0_i32 = arith.constant 0 : i32
    %0 = arith.cmpi eq, %arg1, %c0_i32 : i32
    %1 = arith.extui %0 : i1 to i32
    %c0_i32_0 = arith.constant 0 : i32
    %2 = arith.cmpi ne, %1, %c0_i32_0 : i32
    scf.if %2 {
      %cst_31 = arith.constant 0.000000e+00 : f32
      %46 = vector.broadcast %cst_31 : f32 to vector<16x128xf32>
      %c0_32 = arith.constant 0 : index
      %c0_33 = arith.constant 0 : index
      %47 = vector.load %arg8[%c0_32, %c0_33] : memref<16x128xf32, #tpu.memory_space<vmem>>, vector<16x128xf32>
      tpu.vector_store %arg8[%c0_32, %c0_33], %46 {strides = array<i32>} : memref<16x128xf32, #tpu.memory_space<vmem>>, vector<16x128xf32>,
      %cst_34 = arith.constant 0.000000e+00 : f32
      %48 = vector.broadcast %cst_34 : f32 to vector<16x128xf32>
      %c0_35 = arith.constant 0 : index
      %c0_36 = arith.constant 0 : index
      %49 = vector.load %arg9[%c0_35, %c0_36] : memref<16x128xf32, #tpu.memory_space<vmem>>, vector<16x128xf32>
      tpu.vector_store %arg9[%c0_35, %c0_36], %48 {strides = array<i32>} : memref<16x128xf32, #tpu.memory_space<vmem>>, vector<16x128xf32>,
      %cst_37 = arith.constant 0.000000e+00 : f32
      %50 = vector.broadcast %cst_37 : f32 to vector<16x128xf32>
      %c0_38 = arith.constant 0 : index
      %c0_39 = arith.constant 0 : index
      %51 = vector.load %arg10[%c0_38, %c0_39] : memref<16x128xf32, #tpu.memory_space<vmem>>, vector<16x128xf32>
      tpu.vector_store %arg10[%c0_38, %c0_39], %50 {strides = array<i32>} : memref<16x128xf32, #tpu.memory_space<vmem>>, vector<16x128xf32>,
    } else {
    }
    %c0 = arith.constant 0 : index
    %c0_1 = arith.constant 0 : index
    %3 = vector.load %arg2[%c0, %c0_1] : memref<16x784xbf16, #tpu.memory_space<vmem>>, vector<16x784xbf16>
    %c0_2 = arith.constant 0 : index
    %c0_3 = arith.constant 0 : index
    %4 = vector.load %arg3[%c0_2, %c0_3] : memref<784x128xbf16, #tpu.memory_space<vmem>>, vector<784x128xbf16>
    %cst = arith.constant dense<0.000000e+00> : vector<16x128xf32>
    %5 = tpu.matmul %3, %4, %cst {dimension_numbers = #tpu.dot_dimension_numbers<[1], [0], [0], [1], [0, 0, 1, 1], [], []>} : vector<16x784xbf16>, vector<784x128xbf16>, vector<16x128xf32> -> vector<16x128xf32>
    %c0_4 = arith.constant 0 : index
    %c0_5 = arith.constant 0 : index
    %6 = vector.load %arg8[%c0_4, %c0_5] : memref<16x128xf32, #tpu.memory_space<vmem>>, vector<16x128xf32>
    %cst_6 = arith.constant 0.951229453 : f32
    %7 = vector.broadcast %cst_6 : f32 to vector<16x128xf32>
    %8 = arith.mulf %7, %6 : vector<16x128xf32>
    %9 = arith.addf %8, %5 : vector<16x128xf32>
    %cst_7 = arith.constant 3.000000e-01 : f32
    %10 = vector.broadcast %cst_7 : f32 to vector<16x128xf32>
    %11 = arith.cmpf oge, %9, %10 : vector<16x128xf32>
    %12 = arith.extui %11 : vector<16x128xi1> to vector<16x128xi32>
    %13 = arith.sitofp %12 : vector<16x128xi32> to vector<16x128xf32>
    %cst_8 = arith.constant 3.000000e-01 : f32
    %14 = vector.broadcast %cst_8 : f32 to vector<16x128xf32>
    %15 = arith.mulf %14, %13 : vector<16x128xf32>
    %16 = arith.subf %9, %15 : vector<16x128xf32>
    %c0_9 = arith.constant 0 : index
    %c0_10 = arith.constant 0 : index
    %17 = vector.load %arg8[%c0_9, %c0_10] : memref<16x128xf32, #tpu.memory_space<vmem>>, vector<16x128xf32>
    tpu.vector_store %arg8[%c0_9, %c0_10], %16 {strides = array<i32>} : memref<16x128xf32, #tpu.memory_space<vmem>>, vector<16x128xf32>,
    %18 = arith.truncf %13 : vector<16x128xf32> to vector<16x128xbf16>
    %c0_11 = arith.constant 0 : index
    %c0_12 = arith.constant 0 : index
    %19 = vector.load %arg4[%c0_11, %c0_12] : memref<128x128xbf16, #tpu.memory_space<vmem>>, vector<128x128xbf16>
    %cst_13 = arith.constant dense<0.000000e+00> : vector<16x128xf32>
    %20 = tpu.matmul %18, %19, %cst_13 {dimension_numbers = #tpu.dot_dimension_numbers<[1], [0], [0], [1], [0, 0, 1, 1], [], []>} : vector<16x128xbf16>, vector<128x128xbf16>, vector<16x128xf32> -> vector<16x128xf32>
    %cst_14 = arith.constant 3.000000e-01 : f32
    %21 = vector.broadcast %cst_14 : f32 to vector<16x128xf32>
    %22 = arith.mulf %21, %20 : vector<16x128xf32>
    %c0_15 = arith.constant 0 : index
    %c0_16 = arith.constant 0 : index
    %23 = vector.load %arg9[%c0_15, %c0_16] : memref<16x128xf32, #tpu.memory_space<vmem>>, vector<16x128xf32>
    %cst_17 = arith.constant 0.951229453 : f32
    %24 = vector.broadcast %cst_17 : f32 to vector<16x128xf32>
    %25 = arith.mulf %24, %23 : vector<16x128xf32>
    %26 = arith.addf %25, %22 : vector<16x128xf32>
    %cst_18 = arith.constant 3.000000e-01 : f32
    %27 = vector.broadcast %cst_18 : f32 to vector<16x128xf32>
    %28 = arith.cmpf oge, %26, %27 : vector<16x128xf32>
    %29 = arith.extui %28 : vector<16x128xi1> to vector<16x128xi32>
    %30 = arith.sitofp %29 : vector<16x128xi32> to vector<16x128xf32>
    %cst_19 = arith.constant 3.000000e-01 : f32
    %31 = vector.broadcast %cst_19 : f32 to vector<16x128xf32>
    %32 = arith.mulf %31, %30 : vector<16x128xf32>
    %33 = arith.subf %26, %32 : vector<16x128xf32>
    %c0_20 = arith.constant 0 : index
    %c0_21 = arith.constant 0 : index
    %34 = vector.load %arg9[%c0_20, %c0_21] : memref<16x128xf32, #tpu.memory_space<vmem>>, vector<16x128xf32>
    tpu.vector_store %arg9[%c0_20, %c0_21], %33 {strides = array<i32>} : memref<16x128xf32, #tpu.memory_space<vmem>>, vector<16x128xf32>,
    %cst_22 = arith.constant 3.000000e-01 : f32
    %35 = vector.broadcast %cst_22 : f32 to vector<16x128xf32>
    %36 = arith.mulf %35, %30 : vector<16x128xf32>
    %c0_23 = arith.constant 0 : index
    %c0_24 = arith.constant 0 : index
    %37 = vector.load %arg6[%c0_23, %c0_24] : memref<16x128xf32, #tpu.memory_space<vmem>>, vector<16x128xf32>
    tpu.vector_store %arg6[%c0_23, %c0_24], %36 {strides = array<i32>} : memref<16x128xf32, #tpu.memory_space<vmem>>, vector<16x128xf32>,
    %c0_25 = arith.constant 0 : index
    %c0_26 = arith.constant 0 : index
    %38 = vector.load %arg10[%c0_25, %c0_26] : memref<16x128xf32, #tpu.memory_space<vmem>>, vector<16x128xf32>
    %cst_27 = arith.constant 0.951229453 : f32
    %39 = vector.broadcast %cst_27 : f32 to vector<16x128xf32>
    %40 = arith.mulf %39, %38 : vector<16x128xf32>
    %41 = arith.addf %40, %30 : vector<16x128xf32>
    %c0_28 = arith.constant 0 : index
    %c0_29 = arith.constant 0 : index
    %42 = vector.load %arg10[%c0_28, %c0_29] : memref<16x128xf32, #tpu.memory_space<vmem>>, vector<16x128xf32>
    tpu.vector_store %arg10[%c0_28, %c0_29], %41 {strides = array<i32>} : memref<16x128xf32, #tpu.memory_space<vmem>>, vector<16x128xf32>,
    %c7_i32 = arith.constant 7 : i32
    %43 = arith.cmpi eq, %arg1, %c7_i32 : i32
    %44 = arith.extui %43 : i1 to i32
    %c0_i32_30 = arith.constant 0 : i32
    %45 = arith.cmpi ne, %44, %c0_i32_30 : i32
    scf.if %45 {
      %c0_31 = arith.constant 0 : index
      %c0_32 = arith.constant 0 : index
      %46 = vector.load %arg10[%c0_31, %c0_32] : memref<16x128xf32, #tpu.memory_space<vmem>>, vector<16x128xf32>
      %c0_33 = arith.constant 0 : index
      %c0_34 = arith.constant 0 : index
      %47 = vector.load %arg5[%c0_33, %c0_34] : memref<128x128xf32, #tpu.memory_space<vmem>>, vector<128x128xf32>
      %cst_35 = arith.constant dense<0.000000e+00> : vector<16x128xf32>
      %48 = tpu.matmul %46, %47, %cst_35 {dimension_numbers = #tpu.dot_dimension_numbers<[1], [0], [0], [1], [0, 0, 1, 1], [], []>} : vector<16x128xf32>, vector<128x128xf32>, vector<16x128xf32> -> vector<16x128xf32>
      %cst_36 = arith.constant 0.0443799272 : f32
      %49 = vector.broadcast %cst_36 : f32 to vector<16x128xf32>
      %50 = arith.mulf %49, %48 : vector<16x128xf32>
      %c0_37 = arith.constant 0 : index
      %c0_38 = arith.constant 0 : index
      %51 = vector.load %arg7[%c0_37, %c0_38] : memref<16x128xf32, #tpu.memory_space<vmem>>, vector<16x128xf32>
      tpu.vector_store %arg7[%c0_37, %c0_38], %50 {strides = array<i32>} : memref<16x128xf32, #tpu.memory_space<vmem>>, vector<16x128xf32>,
    } else {
    }
    return
  }
  func.func @transform_0(%arg0: i32, %arg1: i32) -> (i32, i32) {
    %c1_i32 = arith.constant 1 : i32
    %0 = arith.muli %arg1, %c1_i32 : i32
    %1 = arith.addi %0, %arg0 : i32
    %c0_i32 = arith.constant 0 : i32
    %c0_i32_0 = arith.constant 0 : i32
    return %1, %c0_i32 : i32, i32
  }
  func.func @transform_1(%arg0: i32, %arg1: i32) -> (i32, i32) {
    %c0_i32 = arith.constant 0 : i32
    %c0_i32_0 = arith.constant 0 : i32
    %c0_i32_1 = arith.constant 0 : i32
    return %c0_i32, %c0_i32_0 : i32, i32
  }
  func.func @transform_2(%arg0: i32, %arg1: i32) -> (i32, i32) {
    %c0_i32 = arith.constant 0 : i32
    %c0_i32_0 = arith.constant 0 : i32
    %c0_i32_1 = arith.constant 0 : i32
    return %c0_i32, %c0_i32_0 : i32, i32
  }
  func.func @transform_3(%arg0: i32, %arg1: i32) -> (i32, i32) {
    %c0_i32 = arith.constant 0 : i32
    %c0_i32_0 = arith.constant 0 : i32
    %c0_i32_1 = arith.constant 0 : i32
    return %c0_i32, %c0_i32_0 : i32, i32
  }
  func.func @transform_4(%arg0: i32, %arg1: i32) -> (i32, i32) {
    %c1_i32 = arith.constant 1 : i32
    %0 = arith.muli %arg1, %c1_i32 : i32
    %1 = arith.addi %0, %arg0 : i32
    %c0_i32 = arith.constant 0 : i32
    %c0_i32_0 = arith.constant 0 : i32
    return %1, %c0_i32 : i32, i32
  }
  func.func @transform_5(%arg0: i32, %arg1: i32) -> (i32, i32) {
    %c0_i32 = arith.constant 0 : i32
    %c0_i32_0 = arith.constant 0 : i32
    return %arg0, %c0_i32 : i32, i32
  }
}

</mosaic_0001>

<bundles_post_ra>
// kernel: tpu_custom_call.1
= control target key start
LH: loop header
LB: loop body
LE: loop exit
PB: predicated region body
PF: predicated region fallthrough
CT: control target
= control target key end

     0   :  { %11 = vsyncpa [#allocation6], 0  ;;  %s2033_s0 = inlined_call_operand.vmem [shape: bf16[128,784], index: 0, kind: input, shape index: {}]   ;;  %s2034_s1 = inlined_call_operand.vmem [shape: bf16[784,128], index: 1, kind: input, shape index: {}]   ;;  %s2035_s2 = inlined_call_operand.vmem [shape: bf16[128,128], index: 2, kind: input, shape index: {}]   ;;  %s2036_s3 = inlined_call_operand.vmem [shape: f32[128,128], index: 3, kind: input, shape index: {}]   ;;  %s2037_s4 = inlined_call_operand.hbm [shape: f32[128,128], index: 4, kind: output, shape index: {0}]   ;;  %s2038_s5 = inlined_call_operand.hbm [shape: f32[16,128], index: 5, kind: output, shape index: {1}]  }
   0x1   :  { %13 = vsyncpa [#allocation6 + $0x1], 0 }
   0x2   :  { %14 = vsyncpa [#allocation8], 0  ;;  %s1676_s18 = smov 0   ;;  %s1678_s19 = smov 0  }
   0x3   :  { %s1680_s20 = smov 0   ;;  %s1682_s21 = smov 0  }
   0x4   :  { %s1684_s22 = smov 0   ;;  %s1686_s23 = smov 0  }
   0x5 LB: > { %s1099_s24 = sadd.s32 4294967295, %s1638_s23   ;;  %s1100_s25 = sadd.s32 4294967294, %s1638_s23   ;;  %s1638_s23 = sphi %s1686_s23, %s20_s23   ;;  %s1634_s22 = sphi %s1684_s22, %s2046_s22   ;;  %s1630_s21 = sphi %s1682_s21, %s2045_s21   ;;  %s1626_s20 = sphi %s1680_s20, %s2044_s20   ;;  %s1622_s19 = sphi %s1678_s19, %s2043_s19   ;;  %s1618_s18 = sphi %s1676_s18, %s2042_s18  }
   0x6   : > { %s29_s26 = sadd.s32 1, %s1634_s22  ;;  %s132_s27 = sadd.s32 1, %s1626_s20 }
   0x7   : > { %p30_p0 = scmp.ge.s32.totalorder %s29_s26, 8  ;;  %p142_p1 = scmp.ne.s32.totalorder %s1626_s20, %s1622_s19 }
   0x8   : > { %p1712_p2 = scmp.eq.s32.totalorder %s1099_s24, 7  ;;  %p148_p3 = scmp.ne.s32.totalorder %s1622_s19, %s1618_s18 }
   0x9   : > { %s2048_s26 = smov (%p30_p0, %s29_s26), 0  ;;  %p149_p5 = scmp.eq.s32.totalorder %s1100_s25, 7 }
   0xa   : > { %p1722_p4 = por %p1712_p2, %p142_p1  ;;  %s129_s30 = ssub.s32 %s1634_s22, %s2048_s26 }
   0xb   : > { %p1103_p6 = scmp.ge.s32.totalorder %s1638_s23, 1  ;;  %p130_p7 = scmp.eq.s32.totalorder %s129_s30, 0 }
   0xc   : > { %p1729_p8 = por %p149_p5, %p148_p3  ;;  %p214_p9 = scmp.lt.s32.totalorder %s1638_s23, 9 }
   0xd   : > { %s1735_s7 = scalar_select %p130_p7, %s1626_s20, %s132_s27  }
   0xe   : > { %p215_p10 = pnand %p1103_p6, %p214_p9 }
   0xf   : > { %s239_s8 = sand.u32 (!%p215_p10), 1, %s1622_s19   ;;  %s1105_s9 = sshll.u32 (!%p215_p10), %s1630_s21, 1 }
  0x10   : > { %218 = sbr.rel (%p215_p10) target bundleno = 575 (0x23f), region = 36  ;;  %s1104_s10 = sshll.u32 (!%p215_p10), %s239_s8, 4 }
  0x11   : > { %p246_p11 = scmp.lt.s32.totalorder (!%p215_p10), %s1105_s9, 15  ;;  %s1746_s15 = scalar_lea.vmem (!%p215_p10), [#allocation5], %s1104_s10 }
  0x12   : > { %p1107_p12 = scmp.ne.s32.totalorder (!%p215_p10), %s1630_s21, 0 }
  0x15   : > { %s2050_s9 = smov (!%p246_p11, %s1105_s9), 15  ;;  %260 = sbr.rel (%p1107_p12) target bundleno = 33 (0x21), region = 40 }
  0x16   : > { %s1460_s11 = smul.u32 28, %s2050_s9 }
  0x18   : > { %s1744_s14 = scalar_lea.vmem %s2033_s0, %s1460_s11 }
  0x1a   : > { %v1640_v0 = vmov 0.0  }
  0x1b   : > { %261 = vst [vmem:[#allocation2] sm:$0xff] %v1640_v0 }
  0x1c   : > { %262 = vst [vmem:[#allocation2 + $0x8] sm:$0xff] %v1640_v0 }
  0x1d   : > { %263 = vst [vmem:[#allocation3 + $0x8] sm:$0xff] %v1640_v0 }
  0x1e   : > { %264 = vst [vmem:[#allocation3] sm:$0xff] %v1640_v0 }
  0x1f   : > { %265 = vst [vmem:[#allocation4 + $0x8] sm:$0xff] %v1640_v0 }
  0x20   : > { %266 = vst [vmem:[#allocation4] sm:$0xff] %v1640_v0 }
  0x21 PF: > { %v1393_v1 = vld [vmem:[%s2034_s1 + $0x38] sm:$0xff]  ;;  %v1392_v5 = vld [vmem:[%s2034_s1 + $0x30] sm:$0xff]  ;;  %v1391_v9 = vld [vmem:[%s2034_s1 + $0x28] sm:$0xff]  ;;  %vm702_vm0 = vcmask 130048   ;;  %p1371_p13 = scmp.ne.s32.totalorder %s1630_s21, 7 }
  0x22   : > { %v1401_v2 = vld [vmem:[%s2034_s1 + $0x78] sm:$0xff]  ;;  %706 = vmatpush.bf16.msra.mxu0 %v1393_v1  ;;  %v1400_v6 = vld [vmem:[%s2034_s1 + $0x70] sm:$0xff]  ;;  %v1399_v10 = vld [vmem:[%s2034_s1 + $0x68] sm:$0xff] }
  0x23   : > { %v1409_v3 = vld [vmem:[%s2034_s1 + $0xb8] sm:$0xff]  ;;  %720 = vmatpush.bf16.msra.mxu1 %v1401_v2  ;;  %v1408_v7 = vld [vmem:[%s2034_s1 + $0xb0] sm:$0xff]  ;;  %v1407_v11 = vld [vmem:[%s2034_s1 + $0xa8] sm:$0xff] }
  0x24   : > { %v1417_v4 = vld [vmem:[%s2034_s1 + $0xf8] sm:$0xff]  ;;  %734 = vmatpush.bf16.msra.mxu2 %v1409_v3  ;;  %v1416_v8 = vld [vmem:[%s2034_s1 + $0xf0] sm:$0xff]  ;;  %v1415_v12 = vld [vmem:[%s2034_s1 + $0xe8] sm:$0xff] }
  0x25   : > { %748 = vmatpush.bf16.msra.mxu3 %v1417_v4  ;;  %v1390_v13 = vld [vmem:[%s2034_s1 + $0x20] sm:$0xff]  ;;  %v1389_v17 = vld [vmem:[%s2034_s1 + $0x18] sm:$0xff]  ;;  %v1388_v21 = vld [vmem:[%s2034_s1 + $0x10] sm:$0xff] }
  0x26   : > { %707 = vmatpush.bf16.msra.mxu0 %v1392_v5  ;;  %v1398_v14 = vld [vmem:[%s2034_s1 + $0x60] sm:$0xff]  ;;  %v1397_v18 = vld [vmem:[%s2034_s1 + $0x58] sm:$0xff]  ;;  %v1396_v22 = vld [vmem:[%s2034_s1 + $0x50] sm:$0xff] }
  0x27   : > { %721 = vmatpush.bf16.msra.mxu1 %v1400_v6  ;;  %v1406_v15 = vld [vmem:[%s2034_s1 + $0xa0] sm:$0xff]  ;;  %v1405_v19 = vld [vmem:[%s2034_s1 + $0x98] sm:$0xff]  ;;  %v1404_v23 = vld [vmem:[%s2034_s1 + $0x90] sm:$0xff] }
  0x28   : > { %735 = vmatpush.bf16.msra.mxu2 %v1408_v7  ;;  %v1414_v16 = vld [vmem:[%s2034_s1 + $0xe0] sm:$0xff]  ;;  %v1413_v20 = vld [vmem:[%s2034_s1 + $0xd8] sm:$0xff]  ;;  %v1412_v24 = vld [vmem:[%s2034_s1 + $0xd0] sm:$0xff] }
  0x29   : > { %749 = vmatpush.bf16.msra.mxu3 %v1416_v8  ;;  %v1387_v25 = vld [vmem:[%s2034_s1 + $0x8] sm:$0xff]  ;;  %v1386_v29 = vld [vmem:[%s2034_s1] sm:$0xff]  ;;  %v1425_v32 = vld [vmem:[%s2034_s1 + $0x138] sm:$0xff] }
  0x2a   : > { %708 = vmatpush.bf16.msra.mxu0 %v1391_v9  ;;  %v1395_v26 = vld [vmem:[%s2034_s1 + $0x48] sm:$0xff]  ;;  %v1394_v30 = vld [vmem:[%s2034_s1 + $0x40] sm:$0xff]  ;;  %v1382_v34 = vld [vmem:[%s1744_s14 + $0x18] sm:$0xf0] }
  0x2b   : > { %722 = vmatpush.bf16.msra.mxu1 %v1399_v10  ;;  %v1403_v27 = vld [vmem:[%s2034_s1 + $0x88] sm:$0xff]  ;;  %v1402_v31 = vld [vmem:[%s2034_s1 + $0x80] sm:$0xff]  ;;  %v1433_v37 = vld [vmem:[%s2034_s1 + $0x178] sm:$0xff] }
  0x2c   : > { %736 = vmatpush.bf16.msra.mxu2 %v1407_v11  ;;  %v1411_v28 = vld [vmem:[%s2034_s1 + $0xc8] sm:$0xff]  ;;  %v1110_v33 = vld [vmem:[%s1744_s14] sm:$0xf]  ;;  %v1379_v35 = vld [vmem:[%s1744_s14 + $0x4] sm:$0xf] }
  0x2d   : > { %750 = vmatpush.bf16.msra.mxu3 %v1415_v12  ;;  %v1112_v36 = vld [vmem:[%s1744_s14 + $0x1c] sm:$0xf0]  ;;  %v1118_v38 = vld [vmem:[%s1744_s14 + $0x8] sm:$0xf]  ;;  %v1383_v39 = vld [vmem:[%s1744_s14 + $0x20] sm:$0xf0]  ;;  %v1111_v43 = vor.u32 %v1382_v34, %v1110_v33 }
  0x2e   : > { %709 = vmatpush.bf16.msra.mxu0 %v1390_v13  ;;  %v1410_v40 = vld [vmem:[%s2034_s1 + $0xc0] sm:$0xff]  ;;  %v1380_v41 = vld [vmem:[%s1744_s14 + $0xc] sm:$0xf]  ;;  %v1120_v42 = vld [vmem:[%s1744_s14 + $0x24] sm:$0xf0]  ;;  %v1115_v44 = vor.u32 %v1379_v35, %v1112_v36  ;;  %v1119_v45 = vor.u32 %v1383_v39, %v1118_v38 }
  0x2f   : > { %723 = vmatpush.bf16.msra.mxu1 %v1398_v14  ;;  %v1424_v46 = vld [vmem:[%s2034_s1 + $0x130] sm:$0xff]  ;;  %v1123_v47 = vor.u32 %v1380_v41, %v1120_v42  ;;  %v1434_v49 = vld [vmem:[%s2034_s1 + $0x180] sm:$0xff]  ;;  %v1423_v50 = vld [vmem:[%s2034_s1 + $0x128] sm:$0xff]  ;;  %v1641_v42 = vmov 0.0  }
  0x30   : > { %737 = vmatpush.bf16.msra.mxu2 %v1406_v15  ;;  %v1432_v48 = vld [vmem:[%s2034_s1 + $0x170] sm:$0xff]  ;;  %v1431_v51 = vld [vmem:[%s2034_s1 + $0x168] sm:$0xff]  ;;  %v1422_v52 = vld [vmem:[%s2034_s1 + $0x120] sm:$0xff] }
  0x31   : > { %751 = vmatpush.bf16.msra.mxu3 %v1414_v16  ;;  %v1430_v53 = vld [vmem:[%s2034_s1 + $0x160] sm:$0xff]  ;;  %v1421_v54 = vld [vmem:[%s2034_s1 + $0x118] sm:$0xff]  ;;  %v1385_v56 = vld [vmem:[%s1744_s14 + $0x30] sm:$0xf0] }
  0x32   : > { %710 = vmatpush.bf16.msra.mxu0 %v1389_v17  ;;  %v1134_v55 = vld [vmem:[%s1744_s14 + $0x18] sm:$0xf]  ;;  %v1420_v59 = vld [vmem:[%s2034_s1 + $0x110] sm:$0xff]  ;;  %v1419_v61 = vld [vmem:[%s2034_s1 + $0x108] sm:$0xff] }
  0x33   : > { %724 = vmatpush.bf16.msra.mxu1 %v1397_v18  ;;  %v1429_v57 = vld [vmem:[%s2034_s1 + $0x158] sm:$0xff]  ;;  %v1135_v58 = vor.u32 %v1385_v56, %v1134_v55  ;;  %v1428_v60 = vld [vmem:[%s2034_s1 + $0x150] sm:$0xff]  ;;  %v1427_v62 = vld [vmem:[%s2034_s1 + $0x148] sm:$0xff] }
  0x34   : > { %738 = vmatpush.bf16.msra.mxu2 %v1405_v19  ;;  %v1418_v63 = vld [vmem:[%s2034_s1 + $0x100] sm:$0xff]  ;;  %v1126_v0 = vld [vmem:[%s1744_s14 + $0x10] sm:$0xf]  ;;  %v1384_v1 = vld [vmem:[%s1744_s14 + $0x28] sm:$0xf0] }
  0x35   : > { %752 = vmatpush.bf16.msra.mxu3 %v1413_v20  ;;  %v1426_v2 = vld [vmem:[%s2034_s1 + $0x140] sm:$0xff]  ;;  %v1381_v3 = vld [vmem:[%s1744_s14 + $0x14] sm:$0xf]  ;;  %v1128_v4 = vld [vmem:[%s1744_s14 + $0x2c] sm:$0xf0]  ;;  %v1127_v5 = vor.u32 %v1384_v1, %v1126_v0 }
  0x36   : > { %711 = vmatpush.bf16.msra.mxu0 %v1388_v21  ;;  %v1131_v6 = vor.u32 %v1381_v3, %v1128_v4  ;;  %v1442_v7 = vld [vmem:[%s2035_s2 + $0x38] sm:$0xff]  ;;  %v1441_v8 = vld [vmem:[%s2035_s2 + $0x30] sm:$0xff]  ;;  %v1440_v9 = vld [vmem:[%s2035_s2 + $0x28] sm:$0xff] }
  0x37   : > { %725 = vmatpush.bf16.msra.mxu1 %v1396_v22  ;;  %v1439_v10 = vld [vmem:[%s2035_s2 + $0x20] sm:$0xff]  ;;  %v1438_v11 = vld [vmem:[%s2035_s2 + $0x18] sm:$0xff]  ;;  %v1437_v12 = vld [vmem:[%s2035_s2 + $0x10] sm:$0xff] }
  0x38   : > { %739 = vmatpush.bf16.msra.mxu2 %v1404_v23  ;;  %v1436_v13 = vld [vmem:[%s2035_s2 + $0x8] sm:$0xff]  ;;  %v1435_v16 = vld [vmem:[%s2035_s2] sm:$0xff]  ;;  %v903_v55 = vld [vmem:[#allocation3 + $0x8] sm:$0xff] }
  0x39   : > { %753 = vmatpush.bf16.msra.mxu3 %v1412_v24  ;;  %v805_v39 = vld [vmem:[#allocation2 + $0x8] sm:$0xff]  ;;  %v905_v56 = vmul.f32 0.95122945, %v903_v55  ;;  %v924_v4 = vld [vmem:[#allocation4] sm:$0xff] }
  0x3a   : > { %712 = vmatpush.bf16.msra.mxu0 %v1387_v25 }
  0x3b   : > { %726 = vmatpush.bf16.msra.mxu1 %v1395_v26 }
  0x3c   : > { %740 = vmatpush.bf16.msra.mxu2 %v1403_v27  ;;  %v804_v27 = vld [vmem:[#allocation2] sm:$0xff] }
  0x3d   : > { %754 = vmatpush.bf16.msra.mxu3 %v1411_v28  ;;  %v806_v33 = vmul.f32 0.95122945, %v804_v27 }
  0x3e   : > { %713 = vmatpush.bf16.msra.mxu0 %v1386_v29 }
  0x3f   : > { %727 = vmatpush.bf16.msra.mxu1 %v1394_v30 }
  0x40   : > { %741 = vmatpush.bf16.msra.mxu2 %v1402_v31 }
  0x41   : > { %755 = vmatpush.bf16.msra.mxu3 %v1410_v40  ;;  %714 = vmatmul.bf16.vlgmr.msra.gmra.mxu0 %v1111_v43 }
  0x42   : > { %762 = vmatpush.bf16.msrb.mxu0 %v1425_v32  ;;  %728 = vmatmul.bf16.vlgmr.msra.gmra.mxu1 %v1115_v44 }
  0x43   : > { %776 = vmatpush.bf16.msrb.mxu1 %v1433_v37  ;;  %742 = vmatmul.bf16.vlgmr.msra.gmra.mxu2 %v1119_v45  ;;  %v807_v45 = vmul.f32 0.95122945, %v805_v39 }
  0x44   : > { %756 = vmatmul.bf16.vlgmr.msra.gmra.mxu3 %v1123_v47  ;;  %797 = vmatpush.bf16.msrb.mxu2 %v1434_v49 }
  0x45   : > { %887 = vmatpush.bf16.msrb.mxu3 %v1442_v7 }
  0x46   : > { %763 = vmatpush.bf16.msrb.mxu0 %v1424_v46 }
  0x47   : > { %777 = vmatpush.bf16.msrb.mxu1 %v1432_v48 }
  0x49   : > { %888 = vmatpush.bf16.msrb.mxu3 %v1441_v8  ;;  %v926_v8 = vmul.f32 0.95122945, %v924_v4 }
  0x4a   : > { %764 = vmatpush.bf16.msrb.mxu0 %v1423_v50 }
  0x4b   : > { %778 = vmatpush.bf16.msrb.mxu1 %v1431_v51 }
  0x4d   : > { %889 = vmatpush.bf16.msrb.mxu3 %v1440_v9 }
  0x4e   : > { %765 = vmatpush.bf16.msrb.mxu0 %v1422_v52 }
  0x4f   : > { %779 = vmatpush.bf16.msrb.mxu1 %v1430_v53  ;;  %v1642_v53 = vmov 1.0|1.0  }
  0x51   : > { %890 = vmatpush.bf16.msrb.mxu3 %v1439_v10 }
  0x52   : > { %766 = vmatpush.bf16.msrb.mxu0 %v1421_v54 }
  0x53   : > { %780 = vmatpush.bf16.msrb.mxu1 %v1429_v57  ;;  %1332 = vmatmul.msk.bf16.vlgmr.msrb.gmra.mxu2 %vm702_vm0, %v1135_v58  ;;  %v923_v58 = vld [vmem:[#allocation4 + $0x8] sm:$0xff] }
  0x55   : > { %891 = vmatpush.bf16.msrb.mxu3 %v1438_v11 }
  0x56   : > { %767 = vmatpush.bf16.msrb.mxu0 %v1420_v59 }
  0x57   : > { %781 = vmatpush.bf16.msrb.mxu1 %v1428_v60 }
  0x59   : > { %892 = vmatpush.bf16.msrb.mxu3 %v1437_v12 }
  0x5a   : > { %768 = vmatpush.bf16.msrb.mxu0 %v1419_v61  ;;  %v925_v61 = vmul.f32 0.95122945, %v923_v58 }
  0x5b   : > { %782 = vmatpush.bf16.msrb.mxu1 %v1427_v62  ;;  %v904_v62 = vld [vmem:[#allocation3] sm:$0xff] }
  0x5d   : > { %893 = vmatpush.bf16.msrb.mxu3 %v1436_v13 }
  0x5e   : > { %769 = vmatpush.bf16.msrb.mxu0 %v1418_v63 }
  0x5f   : > { %783 = vmatpush.bf16.msrb.mxu1 %v1426_v2  ;;  %v906_v2 = vmul.f32 0.95122945, %v904_v62 }
  0x61   : > { %770 = vmatmul.bf16.vlgmr.msrb.gmra.mxu0 %v1127_v5  ;;  %894 = vmatpush.bf16.msrb.mxu3 %v1435_v16 }
  0x62   : > { %784 = vmatmul.bf16.vlgmr.msrb.gmra.mxu1 %v1131_v6 }
  0xbe   : > { %v715_v14 = vpop.f32.mrf.mxu0 }
  0xbf   : > { %v729_v15 = vpop.f32.mrf.mxu1 }
  0xc0   : > { %v730_v18 = vadd.f32 %v729_v15, %v715_v14 }
  0xc6   : > { %v743_v17 = vpop.f32.mrf.mxu2  ;;  %v717_v19 = vpop.f32.mrf.mxu0 }
  0xc7   : > { %v731_v20 = vpop.f32.mrf.mxu1  ;;  %v757_v21 = vpop.f32.mrf.mxu3  ;;  %v744_v23 = vadd.f32 %v743_v17, %v730_v18 }
  0xc8   : > { %v732_v25 = vadd.f32 %v731_v20, %v717_v19 }
  0xc9   : > { %v758_v24 = vadd.f32 %v757_v21, %v744_v23 }
  0xce   : > { %v745_v22 = vpop.f32.mrf.mxu2 }
  0xcf   : > { %v746_v31 = vadd.f32 %v745_v22, %v732_v25  ;;  %v759_v34 = vpop.f32.mrf.mxu3 }
  0xd1   : > { %v760_v36 = vadd.f32 %v759_v34, %v746_v31 }
  0xd6   : > { %v799_v30 = vpop.f32.mrf.mxu2 }
  0xde   : > { %v771_v26 = vpop.f32.mrf.mxu0  ;;  %v801_v47 = vpop.f32.mrf.mxu2 }
  0xdf   : > { %v772_v28 = vadd.f32 %v771_v26, %v758_v24  ;;  %v785_v29 = vpop.f32.mrf.mxu1 }
  0xe1   : > { %v786_v32 = vadd.f32 %v785_v29, %v772_v28 }
  0xe3   : > { %v800_v35 = vadd.f32 %v799_v30, %v786_v32 }
  0xe5   : > { %v808_v37 = vadd.f32 %v806_v33, %v800_v35 }
  0xe6   : > { %v773_v38 = vpop.f32.mrf.mxu0 }
  0xe7   : > { %v774_v40 = vadd.f32 %v773_v38, %v760_v36  ;;  %vm810_vm1 = vcmp.ge.f32.partialorder %v808_v37, 0.3  ;;  %v787_v41 = vpop.f32.mrf.mxu1 }
  0xe8   : > { %v1333_v43 = vsel %vm810_vm1, 1.0, %v1641_v42 }
  0xe9   : > { %v788_v44 = vadd.f32 %v787_v41, %v774_v40  ;;  %v816_v46 = vmul.f32 0.3, %v1333_v43 }
  0xeb   : > { %v802_v48 = vadd.f32 %v801_v47, %v788_v44  ;;  %v818_v49 = vsub.f32 %v808_v37, %v816_v46 }
  0xed   : > { %v809_v50 = vadd.f32 %v807_v45, %v802_v48  ;;  %820 = vst [vmem:[#allocation2] sm:$0xff] %v818_v49 }
  0xef   : > { %vm811_vm2 = vcmp.ge.f32.partialorder %v809_v50, 0.3 }
  0xf0   : > { %v1334_v51 = vsel %vm811_vm2, 1.0, %v1641_v42  ;;  %vm1367_vm3 = vmpackc.low %vm811_vm2, %vm810_vm1 }
  0xf1   : > { %v817_v52 = vmul.f32 0.3, %v1334_v51  ;;  %1368 = vmatmul.msk.bf16.vlgmr.msrb.gmra.mxu3 %vm1367_vm3, %v1642_v53 }
  0xf3   : > { %v819_v54 = vsub.f32 %v809_v50, %v817_v52 }
  0xf5   : > { %821 = vst [vmem:[#allocation2 + $0x8] sm:$0xff] %v819_v54 }
 0x174   : > { %v896_v57 = vpop.f32.mrf.mxu3 }
 0x175   : > { %v901_v59 = vmul.f32 0.3, %v896_v57 }
 0x177   : > { %v907_v60 = vadd.f32 %v905_v56, %v901_v59 }
 0x179   : > { %vm909_vm4 = vcmp.ge.f32.partialorder %v907_v60, 0.3 }
 0x17a   : > { %v1369_v63 = vsel %vm909_vm4, 1.0, %v1641_v42 }
 0x17b   : > { %v915_v0 = vmul.f32 0.3, %v1369_v63  ;;  %v927_v1 = vadd.f32 %v1369_v63, %v925_v61 }
 0x17c   : > { %v898_v3 = vpop.f32.mrf.mxu3 }
 0x17d   : > { %v917_v5 = vsub.f32 %v907_v60, %v915_v0  ;;  %921 = vst [vmem:[%s1746_s15] sm:$0xff] %v915_v0  ;;  %v902_v6 = vmul.f32 0.3, %v898_v3 }
 0x17e   : > { %929 = vst [vmem:[#allocation4 + $0x8] sm:$0xff] %v927_v1 }
 0x17f   : > { %919 = vst [vmem:[#allocation3 + $0x8] sm:$0xff] %v917_v5  ;;  %v908_v7 = vadd.f32 %v906_v2, %v902_v6 }
 0x181   : > { %vm910_vm5 = vcmp.ge.f32.partialorder %v908_v7, 0.3 }
 0x182   : > { %v1370_v9 = vsel %vm910_vm5, 1.0, %v1641_v42 }
 0x183   : > { %v916_v10 = vmul.f32 0.3, %v1370_v9  ;;  %v928_v11 = vadd.f32 %v1370_v9, %v926_v8  ;;  %934 = sbr.rel (%p1371_p13) target bundleno = 554 (0x22a), region = 44 }
 0x185   : > { %v918_v12 = vsub.f32 %v908_v7, %v916_v10  ;;  %922 = vst [vmem:[%s1746_s15 + $0x8] sm:$0xff] %v916_v10 }
 0x186   : > { %930 = vst [vmem:[#allocation4] sm:$0xff] %v928_v11 }
 0x187   : > { %920 = vst [vmem:[#allocation3] sm:$0xff] %v918_v12 }
 0x188   : > { %v952_v13 = vld [vmem:[%s2036_s3 + $0x78] sm:$0xff]  ;;  %v951_v14 = vld [vmem:[%s2036_s3 + $0x70] sm:$0xff]  ;;  %v950_v15 = vld [vmem:[%s2036_s3 + $0x68] sm:$0xff] }
 0x189   : > { %953 = vmatpush.msra.mxu0 %v952_v13  ;;  %1444 = vmatpush.msra.mxu1 %v952_v13  ;;  %v949_v16 = vld [vmem:[%s2036_s3 + $0x60] sm:$0xff]  ;;  %v948_v17 = vld [vmem:[%s2036_s3 + $0x58] sm:$0xff]  ;;  %v947_v18 = vld [vmem:[%s2036_s3 + $0x50] sm:$0xff] }
 0x18a   : > { %v946_v19 = vld [vmem:[%s2036_s3 + $0x48] sm:$0xff]  ;;  %v945_v20 = vld [vmem:[%s2036_s3 + $0x40] sm:$0xff]  ;;  %v944_v21 = vld [vmem:[%s2036_s3 + $0x38] sm:$0xff] }
 0x18b   : > { %954 = vmatpush.msra.mxu0 %v951_v14  ;;  %1445 = vmatpush.msra.mxu1 %v951_v14  ;;  %v943_v22 = vld [vmem:[%s2036_s3 + $0x30] sm:$0xff]  ;;  %v942_v23 = vld [vmem:[%s2036_s3 + $0x28] sm:$0xff]  ;;  %v941_v24 = vld [vmem:[%s2036_s3 + $0x20] sm:$0xff] }
 0x18c   : > { %v940_v25 = vld [vmem:[%s2036_s3 + $0x18] sm:$0xff]  ;;  %v939_v26 = vld [vmem:[%s2036_s3 + $0x10] sm:$0xff]  ;;  %v938_v27 = vld [vmem:[%s2036_s3 + $0x8] sm:$0xff] }
 0x18d   : > { %955 = vmatpush.msra.mxu0 %v950_v15  ;;  %1446 = vmatpush.msra.mxu1 %v950_v15  ;;  %v937_v28 = vld [vmem:[%s2036_s3] sm:$0xff]  ;;  %v935_v29 = vld [vmem:[#allocation4 + $0x8] sm:$0xff] }
 0x18e   : > { %v936_v30 = vld [vmem:[#allocation4] sm:$0xff] }
 0x18f   : > { %956 = vmatpush.msra.mxu0 %v949_v16  ;;  %1447 = vmatpush.msra.mxu1 %v949_v16 }
 0x191   : > { %957 = vmatpush.msra.mxu0 %v948_v17  ;;  %1448 = vmatpush.msra.mxu1 %v948_v17 }
 0x193   : > { %958 = vmatpush.msra.mxu0 %v947_v18  ;;  %1449 = vmatpush.msra.mxu1 %v947_v18 }
 0x195   : > { %959 = vmatpush.msra.mxu0 %v946_v19  ;;  %1450 = vmatpush.msra.mxu1 %v946_v19 }
 0x197   : > { %960 = vmatpush.msra.mxu0 %v945_v20  ;;  %1451 = vmatpush.msra.mxu1 %v945_v20 }
 0x199   : > { %961 = vmatpush.msra.mxu0 %v944_v21  ;;  %1452 = vmatpush.msra.mxu1 %v944_v21 }
 0x19b   : > { %962 = vmatpush.msra.mxu0 %v943_v22  ;;  %1453 = vmatpush.msra.mxu1 %v943_v22 }
 0x19d   : > { %963 = vmatpush.msra.mxu0 %v942_v23  ;;  %1454 = vmatpush.msra.mxu1 %v942_v23 }
 0x19f   : > { %964 = vmatpush.msra.mxu0 %v941_v24  ;;  %1455 = vmatpush.msra.mxu1 %v941_v24 }
 0x1a1   : > { %965 = vmatpush.msra.mxu0 %v940_v25  ;;  %1456 = vmatpush.msra.mxu1 %v940_v25 }
 0x1a3   : > { %966 = vmatpush.msra.mxu0 %v939_v26  ;;  %1457 = vmatpush.msra.mxu1 %v939_v26 }
 0x1a5   : > { %967 = vmatpush.msra.mxu0 %v938_v27  ;;  %1458 = vmatpush.msra.mxu1 %v938_v27 }
 0x1a7   : > { %968 = vmatpush.msra.mxu0 %v937_v28  ;;  %1459 = vmatpush.msra.mxu1 %v937_v28 }
 0x1a8   : > { %969 = vmatmul.f32.vlgmr.msra.gmra.mxu0 %v935_v29  ;;  %972 = vmatmul.f32.vlgmr.msra.gmra.mxu1 %v936_v30 }
 0x225   : > { %v970_v31 = vpop.f32.mrf.mxu0  ;;  %v973_v32 = vpop.f32.mrf.mxu1 }
 0x226   : > { %v976_v33 = vmul.f32 0.044379927, %v970_v31  ;;  %v977_v34 = vmul.f32 0.044379927, %v973_v32 }
 0x228   : > { %978 = vst [vmem:[#allocation7] sm:$0xff] %v976_v33 }
 0x229   : > { %979 = vst [vmem:[#allocation7 + $0x8] sm:$0xff] %v977_v34 }
 0x22a PF: > { %s1443_s13 = sshll.u32 %s1630_s21, 4  ;;  %s994_s25 = sshll.u32 %s1746_s15, 4  ;;  %s995_s25 = int_to_ptr.vmem [resolvable:$true] %s994_s25 }
 0x22b   : > { %s993_s24 = scalar_lea.hbm %s2037_s4, %s1443_s13  ;;  %s981_s14 = scalar_lea.sflag [#allocation6], %s239_s8 }
 0x22c   : > { %s996_s27 = sshll.u32 %s993_s24, 4  ;;  %s1548_s21 = scalar_lea.hbm %s2037_s4, 128  ;;  %s997_s27 = int_to_ptr.hbm [resolvable:$true] %s996_s27 }
 0x22d   : > { %s1542_s30 = sshra.s32 %s997_s27, 4  ;;  %s1543_s30 = int_to_ptr.hbm [resolvable:$true] %s1542_s30 }
 0x22e   : > { %s1544_s9 = scalar_lea.hbm %s1543_s30, 16  ;;  %p1549_p5 = scmp.lt.s32.totalorder %s1543_s30, %s2037_s4 }
 0x22f   : > { %p1545_p0 = scmp.ne.s32.totalorder %s1543_s30, %s1544_s9  ;;  %p1550_p6 = scmp.lt.s32.totalorder %s1548_s21, %s1544_s9 }
 0x231   : > { %p1546_p1 = pnand %p1545_p0, %p1722_p4  ;;  %p1551_p7 = por %p1550_p6, %p1549_p5 }
 0x233   : > { %p1547_p3 = pneg %p1546_p1 }
 0x235   : > { %p1552_p9 = pnand %p1551_p7, %p1547_p3 }
 0x237   : > { %1555 = shalt.err (!%p1552_p9)
}
 0x238   : > { %s1643_s8 = smov 128   ;;  %s1644_s15 = smov 8  }
 0x239   : > { %1461 = dma.vmem_to_hbm [thread:$0]  (%p1722_p4), %s995_s25, 256, %s997_s27, %s981_s14, %s1643_s8, %s1643_s8, %s1644_s15  }
 0x23a   : > { %s1013_s24 = sshll.u32 %s2038_s5, 4  ;;  %s1645_s10 = smov [#allocation7]   ;;  %s1014_s24 = int_to_ptr.hbm [resolvable:$true] %s1013_s24 }
 0x23b   : > { %s1011_s11 = sshll.u32 %s1645_s10, 4  ;;  %s1012_s11 = int_to_ptr.vmem [resolvable:$true] %s1011_s11 }
 0x23c   : > { %1463 = dma.vmem_to_hbm [thread:$0]  (%p1712_p2), %s1012_s11, 256, %s1014_s24, [#allocation8], %s1643_s8, %s1643_s8, %s1644_s15  }
 0x23d   : > { %1609 = dma.done.wait (%p1712_p2), [#allocation8], 256  }
 0x23e   : > { %1611 = vsyncadd (%p1712_p2), [#allocation8], 4294967040 }
 0x23f PF: > { %p1473_p4 = scmp.ge.s32.totalorder %s1638_s23, 2  ;;  %s1033_s29 = sand.u32 1, %s1618_s18  }
 0x240   : > { %s1034_s25 = scalar_lea.sflag [#allocation6], %s1033_s29 }
 0x241   : > { %p1468_p10 = pnand %p1473_p4, %p1729_p8 }
 0x243   : > { %p1469_p11 = pneg %p1468_p10 }
 0x245   : > { %1613 = dma.done.wait (%p1469_p11), %s1034_s25, 256  }
 0x246   : > { %1615 = vsyncadd (%p1469_p11), %s1034_s25, 4294967040  ;;  %s20_s23 = sadd.s32 1, %s1638_s23   ;;  %s2042_s18 = smov %s1622_s19 }
 0x247   : > { %p17_p12 = scmp.ge.s32.totalorder %s20_s23, 10   ;;  %s2043_s19 = smov %s1626_s20 }
 0x248   : > { %s2044_s20 = smov %s1735_s7  ;;  %s2045_s21 = smov %s1634_s22 }
 0x249   : > { %s2046_s22 = smov %s2048_s26  ;;  %19 = sbr.rel (!%p17_p12) target bundleno = 5 (0x5), region = 88 }
 0x24e   :  { %1040 = vsyncpa [#allocation6], 1 }
 0x24f   :  { %1042 = vsyncpa [#allocation6 + $0x1], 1 }
 0x250   :  { %1043 = vsyncpa [#allocation8], 1 }

</bundles_post_ra>
